<compile_context>
chip_gen: v7x
topology: tpu7x:2x2x1
jax: 0.10.0
libtpu: 0.0.40
codegen_flags: <defaults>
</compile_context>

<pallas_src>
import functools

import jax
import jax.numpy as jnp
from jax.experimental import pallas as pl
from jax.experimental.pallas import tpu as pltpu


def _dtc_kernel(x_ref, w1k_ref, w2_ref, sh_ref, o_ref, xbuf_ref, *,
                K, dilation, pad, residual):
    """One (batch, time-tile) grid step.

    x_ref    : (C_in, Tt)          current input time tile
    w1k_ref  : (C_out, K*C_in)     conv1 weight with BN1-scaled depthwise taps
                                   folded in (column block k = tap k)
    w2_ref   : (C_out, C_out)      BN3-folded pointwise conv2 weight
    sh_ref   : (C_out, 2)          folded shifts after conv1 / conv2
    o_ref    : (C_out, Tt)         output tile
    xbuf_ref : (C_in, pad + Tt)    persistent VMEM buffer: causal left context
                                   (pad cols) + current tile; the context is
                                   carried between consecutive time tiles of
                                   the same batch row.
    """
    c_in, tile_t = x_ref.shape
    cdt = w1k_ref.dtype                                  # matmul compute dtype
    cur = x_ref[...]                                     # (C_in, Tt)

    if pad > 0:
        t_idx = pl.program_id(1)

        @pl.when(t_idx == 0)
        def _():  # start of a batch row: causal left padding is zeros
            xbuf_ref[:, :pad] = jnp.zeros((c_in, pad), cdt)

        @pl.when(t_idx > 0)
        def _():  # carry the previous tile's tail as this tile's left context
            xbuf_ref[:, :pad] = xbuf_ref[:, tile_t:tile_t + pad]

        xbuf_ref[:, pad:] = cur.astype(cdt)

        # (K*C_in, Tt) shifted stack: row block k holds x shifted by k*dilation.
        taps = [xbuf_ref[:, k * dilation:k * dilation + tile_t] for k in range(K)]
        xstack = jnp.concatenate(taps, axis=0) if K > 1 else taps[0]
    else:  # pad == 0  =>  K == 1, no causal context needed (xbuf_ref unused)
        xstack = cur.astype(cdt)

    # ---- depthwise conv (+BN1) + pointwise conv1 (+BN2), one MXU pass ----
    z = jnp.dot(w1k_ref[...], xstack, preferred_element_type=jnp.float32)
    z = jnp.maximum(z + sh_ref[:, 0:1], 0.0)             # ReLU, f32

    # ---- pointwise conv2 (+ folded BN3) ----
    u = jnp.dot(w2_ref[...], z.astype(cdt), preferred_element_type=jnp.float32)
    u = u + sh_ref[:, 1:2]

    # ---- residual (only when in_channels == out_channels) + ReLU ----
    if residual:
        u = u + cur.astype(jnp.float32)
    o_ref[...] = jnp.maximum(u, 0.0).astype(o_ref.dtype)


def _choose_tile_t(T, pad, bytes_per_lane, vmem_budget=40 * 2**20,
                   tile_t_max=2048):
    """Largest useful time tile: whole T if it fits the VMEM budget, otherwise
    the biggest multiple of 128 lanes that (a) stays inside the budget and
    (b) covers the causal receptive field (so one previous tile holds the halo)."""
    if T <= tile_t_max and T * bytes_per_lane <= vmem_budget:
        return T
    tile = min(tile_t_max, max(128, (vmem_budget // bytes_per_lane) // 128 * 128))
    while tile < pad:                       # halo must fit within one time tile
        tile += 128
    return tile if tile < T else T


def dtc_block(x, params, *, kernel_size, dilation, tile_t=None,
              compute_dtype=jnp.float32, out_dtype=None, eps=1e-5):
    """x: (N, C_in, T) in f32 or bf16, same layout as the PyTorch module.
    Returns (N, C_out, T) in `out_dtype` (default: x.dtype).

    compute_dtype: dtype of the two MXU matmul operands (accumulation is f32).
    On bandwidth-limited v5e prefer bf16 x / out / compute_dtype."""
    N, C_in, T = x.shape
    C_out = params["w1"].shape[0]
    K = kernel_size
    pad = (K - 1) * dilation
    residual = (C_in == C_out)
    out_dtype = x.dtype if out_dtype is None else out_dtype
    cdt = compute_dtype

    # ---- fold eval-mode BatchNorm + biases into the conv weights ----
    def fold_bn(p):
        gamma, beta, mean, var = p
        scale = gamma / jnp.sqrt(var + eps)
        return scale, beta - mean * scale

    s1, h1 = fold_bn(params["bn1"])
    s2, h2 = fold_bn(params["bn2"])
    s3, h3 = fold_bn(params["bn3"])

    wd, bd = params["wd"], params["bd"]          # (C_in, K), (C_in,)
    w1, b1 = params["w1"], params["b1"]          # (C_out, C_in), (C_out,)
    w2, b2 = params["w2"], params["b2"]          # (C_out, C_out), (C_out,)

    w1f = w1 * s2[:, None]                       # BN2-folded conv1 weight, f32
    dws = wd * s1[:, None]                       # BN1-scaled depthwise taps
    # Per-tap conv1 weights stacked along the contraction axis:
    # w1k[:, k*C_in + c] = w1f[:, c] * dws[c, k]
    w1k = (w1f[:, None, :] * dws.T[None, :, :]).reshape(C_out, K * C_in)
    w1k = w1k.astype(cdt)
    w2f = (w2 * s3[:, None]).astype(cdt)         # BN3-folded conv2 weight

    # Depthwise bias + BN1 shift folded through conv1 into the conv1 shift.
    shift1 = w1f @ (bd * s1 + h1) + (b1 * s2 + h2)
    shift2 = b2 * s3 + h3
    shifts = jnp.stack([shift1, shift2], axis=1).astype(jnp.float32)  # (C_out, 2)

    # ---- VMEM accounting (per time column) for tile / vmem-limit choice ----
    xb = jnp.dtype(x.dtype).itemsize
    ob = jnp.dtype(out_dtype).itemsize
    cb = jnp.dtype(cdt).itemsize
    bytes_per_lane = (2 * C_in * xb            # double-buffered x block
                      + 2 * C_out * ob         # double-buffered out block
                      + (K + 1) * C_in * cb    # xbuf scratch + shifted stack
                      + 2 * C_in * 4           # cur / staging (f32)
                      + 3 * C_out * 4)         # z, relu(z), u intermediates (f32)

    if tile_t is None:
        tile_t = _choose_tile_t(T, pad, bytes_per_lane)
    nt = pl.cdiv(T, tile_t)
    if tile_t != T and tile_t % 128 != 0:
        raise ValueError("tile_t must equal T or be a multiple of 128 lanes")
    if nt > 1 and pad > tile_t:
        raise ValueError("causal receptive field must fit within one time tile")

    est_bytes = (bytes_per_lane * tile_t + (K + 1) * C_in * pad * 4
                 + (w1k.size + w2f.size) * cb + (1 << 20))
    # 48 MiB cap keeps headroom inside v7x's 64 MiB physical VMEM; v5e/v6e
    # (128 MiB) could go higher but this is already past the DMA-efficiency knee.
    vmem_limit = int(min(48 * 2**20, max(16 * 2**20, 2 * est_bytes)))

    kernel = functools.partial(_dtc_kernel, K=K, dilation=dilation,
                               pad=pad, residual=residual)

    full = lambda a: pl.BlockSpec(a.shape, lambda n, t: (0,) * a.ndim)
    xbuf_cols = pad + tile_t if pad > 0 else tile_t

    out = pl.pallas_call(
        kernel,
        out_shape=jax.ShapeDtypeStruct((N, C_out, T), out_dtype),
        grid=(N, nt),
        in_specs=[
            # NOTE: a pipeline_mode=pl.Buffered(3) sweep on this spec is a
            # possible small further win once tile_t is fixed.
            pl.BlockSpec((None, C_in, tile_t), lambda n, t: (n, 0, t)),  # x tile
            full(w1k), full(w2f), full(shifts),
        ],
        out_specs=pl.BlockSpec((None, C_out, tile_t), lambda n, t: (n, 0, t)),
        scratch_shapes=[pltpu.VMEM((C_in, xbuf_cols), cdt)],
        compiler_params=pltpu.CompilerParams(
            # batch axis splits across cores; time axis is sequential so the
            # causal halo is carried in VMEM (x is read from HBM only once).
            dimension_semantics=("parallel", "arbitrary"),
            vmem_limit_bytes=vmem_limit),
    )(x, w1k, w2f, shifts)
    return out


def dtc_block_ref(x, params, *, kernel_size, dilation, eps=1e-5):
    """Pure-JAX reference mirroring the PyTorch forward (eval-mode BN), f32."""
    x = x.astype(jnp.float32)
    N, C_in, T = x.shape
    C_out = params["w1"].shape[0]
    pad = (kernel_size - 1) * dilation
    x_pad = jnp.pad(x, ((0, 0), (0, 0), (pad, 0)))

    acc = jnp.zeros((N, C_in, T), jnp.float32)
    for k in range(kernel_size):
        off = k * dilation
        acc = acc + x_pad[:, :, off:off + T] * params["wd"][:, k][None, :, None]
    acc = acc + params["bd"][None, :, None]

    def bn(v, p):
        g, b, m, va = p
        return ((v - m[None, :, None]) / jnp.sqrt(va + eps)[None, :, None]
                * g[None, :, None] + b[None, :, None])

    y = bn(acc, params["bn1"])
    z = jnp.einsum("oc,nct->not", params["w1"], y) + params["b1"][None, :, None]
    z = jnp.maximum(bn(z, params["bn2"]), 0.0)
    u = jnp.einsum("oc,nct->not", params["w2"], z) + params["b2"][None, :, None]
    u = bn(u, params["bn3"])
    if C_in == C_out:
        u = u + x
    return jnp.maximum(u, 0.0)


def _make_params(key, C_in, C_out, K):
    ks = jax.random.split(key, 18)

    def bn_params(k1, k2, k3, k4, C):
        return (1.0 + 0.1 * jax.random.normal(k1, (C,), jnp.float32),
                0.1 * jax.random.normal(k2, (C,), jnp.float32),
                0.1 * jax.random.normal(k3, (C,), jnp.float32),
                1.0 + 0.1 * jax.random.uniform(k4, (C,), jnp.float32))

    return {
        # PyTorch depthwise weight (C_in, 1, K) stored as (C_in, K)
        "wd": 0.3 * jax.random.normal(ks[0], (C_in, K), jnp.float32),
        "bd": 0.1 * jax.random.normal(ks[1], (C_in,), jnp.float32),
        # PyTorch 1x1 conv weight (C_out, C_in, 1) stored as (C_out, C_in)
        "w1": 0.2 * jax.random.normal(ks[2], (C_out, C_in), jnp.float32),
        "b1": 0.1 * jax.random.normal(ks[3], (C_out,), jnp.float32),
        "w2": 0.2 * jax.random.normal(ks[4], (C_out, C_out), jnp.float32),
        "b2": 0.1 * jax.random.normal(ks[5], (C_out,), jnp.float32),
        "bn1": bn_params(ks[6], ks[7], ks[8], ks[9], C_in),
        "bn2": bn_params(ks[10], ks[11], ks[12], ks[13], C_out),
        "bn3": bn_params(ks[14], ks[15], ks[16], ks[17], C_out),
    }


if __name__ == "__main__":
    configs = [
        # residual path (C_in == C_out), single time tile, f32
        dict(N=2, C_in=32, C_out=32, T=16, K=3, dil=2,
             tile_t=None, cdt=jnp.float32, xdt=jnp.float32, tol=5e-3),
        # multi time-tile: halo carried across tiles, partial last tile, f32
        dict(N=2, C_in=32, C_out=32, T=400, K=5, dil=4,
             tile_t=128, cdt=jnp.float32, xdt=jnp.float32, tol=5e-3),
        # channel-changing path (no residual), f32
        dict(N=2, C_in=24, C_out=40, T=16, K=3, dil=1,
             tile_t=None, cdt=jnp.float32, xdt=jnp.float32, tol=5e-3),
        # bf16 matmul path (v6e/v7x MXU), f32 I/O
        dict(N=2, C_in=32, C_out=32, T=400, K=5, dil=4,
             tile_t=128, cdt=jnp.bfloat16, xdt=jnp.float32, tol=1.5e-1),
        # bf16 I/O + bf16 matmuls (bandwidth-limited v5e mode)
        dict(N=2, C_in=32, C_out=32, T=400, K=5, dil=4,
             tile_t=128, cdt=jnp.bfloat16, xdt=jnp.bfloat16, tol=2e-1),
    ]

    key = jax.random.PRNGKey(0)
    for cfg in configs:
        key, kp, kx = jax.random.split(key, 3)
        params = _make_params(kp, cfg["C_in"], cfg["C_out"], cfg["K"])
        x = jax.random.normal(kx, (cfg["N"], cfg["C_in"], cfg["T"]), jnp.float32)
        x = x.astype(cfg["xdt"])

        out = dtc_block(x, params, kernel_size=cfg["K"], dilation=cfg["dil"],
                        tile_t=cfg["tile_t"], compute_dtype=cfg["cdt"])
        out = jax.block_until_ready(out)

        ref = dtc_block_ref(x, params, kernel_size=cfg["K"], dilation=cfg["dil"])
        assert out.shape == (cfg["N"], cfg["C_out"], cfg["T"])
        err = float(jnp.max(jnp.abs(out.astype(jnp.float32) - ref)))
        assert jnp.allclose(out.astype(jnp.float32), ref,
                            atol=cfg["tol"], rtol=cfg["tol"]), (cfg, err)

    print("KERNEL_OK")
</pallas_src>

<mosaic_0001>
module attributes {stable_mosaic.version = 11 : i64} {
  func.func @_dtc_kernel(%arg0: i32, %arg1: i32, %arg2: memref<1x32x16xf32, #tpu.memory_space<vmem>>, %arg3: memref<32x96xf32, #tpu.memory_space<vmem>>, %arg4: memref<32x32xf32, #tpu.memory_space<vmem>>, %arg5: memref<32x2xf32, #tpu.memory_space<vmem>>, %arg6: memref<1x32x16xf32, #tpu.memory_space<vmem>>, %arg7: memref<32x20xf32, #tpu.memory_space<vmem>>) attributes {dimension_semantics = [#tpu.dimension_semantics<parallel>, #tpu.dimension_semantics<arbitrary>], iteration_bounds = array<i64: 2, 1>, scalar_prefetch = 0 : i64, scratch_operands = 1 : i64, tpu.core_type = #tpu.core_type<tc>, window_params = [{transform_indices = @transform_0, window_bounds = array<i64: 1, 32, 16>}, {pipeline_mode = #tpu.pipeline_mode<synchronous>, transform_indices = @transform_1, window_bounds = array<i64: 32, 96>}, {pipeline_mode = #tpu.pipeline_mode<synchronous>, transform_indices = @transform_2, window_bounds = array<i64: 32, 32>}, {pipeline_mode = #tpu.pipeline_mode<synchronous>, transform_indices = @transform_3, window_bounds = array<i64: 32, 2>}, {transform_indices = @transform_4, window_bounds = array<i64: 1, 32, 16>}]} {
    %c0 = arith.constant 0 : index
    %c0_0 = arith.constant 0 : index
    %c0_1 = arith.constant 0 : index
    %0 = vector.load %arg2[%c0, %c0_0, %c0_1] : memref<1x32x16xf32, #tpu.memory_space<vmem>>, vector<1x32x16xf32>
    %1 = vector.shape_cast %0 : vector<1x32x16xf32> to vector<32x16xf32>
    %c0_i32 = arith.constant 0 : i32
    %2 = arith.cmpi eq, %arg1, %c0_i32 : i32
    %3 = arith.extui %2 : i1 to i32
    %c0_i32_2 = arith.constant 0 : i32
    %4 = arith.cmpi ne, %3, %c0_i32_2 : i32
    scf.if %4 {
      %cst_24 = arith.constant 0.000000e+00 : f32
      %31 = vector.broadcast %cst_24 : f32 to vector<32x4xf32>
      %c0_25 = arith.constant 0 : index
      %c0_26 = arith.constant 0 : index
      %32 = vector.load %arg7[%c0_25, %c0_26] : memref<32x20xf32, #tpu.memory_space<vmem>>, vector<32x4xf32>
      tpu.vector_store %arg7[%c0_25, %c0_26], %31 {strides = array<i32>} : memref<32x20xf32, #tpu.memory_space<vmem>>, vector<32x4xf32>,
    } else {
    }
    %c0_i32_3 = arith.constant 0 : i32
    %5 = arith.cmpi sgt, %arg1, %c0_i32_3 : i32
    %6 = arith.extui %5 : i1 to i32
    %c0_i32_4 = arith.constant 0 : i32
    %7 = arith.cmpi ne, %6, %c0_i32_4 : i32
    scf.if %7 {
      %c0_24 = arith.constant 0 : index
      %c16 = arith.constant 16 : index
      %31 = vector.load %arg7[%c0_24, %c16] : memref<32x20xf32, #tpu.memory_space<vmem>>, vector<32x4xf32>
      %c0_25 = arith.constant 0 : index
      %c0_26 = arith.constant 0 : index
      %32 = vector.load %arg7[%c0_25, %c0_26] : memref<32x20xf32, #tpu.memory_space<vmem>>, vector<32x4xf32>
      tpu.vector_store %arg7[%c0_25, %c0_26], %31 {strides = array<i32>} : memref<32x20xf32, #tpu.memory_space<vmem>>, vector<32x4xf32>,
    } else {
    }
    %c0_5 = arith.constant 0 : index
    %c4 = arith.constant 4 : index
    %8 = vector.load %arg7[%c0_5, %c4] : memref<32x20xf32, #tpu.memory_space<vmem>>, vector<32x16xf32>
    tpu.vector_store %arg7[%c0_5, %c4], %1 {strides = array<i32>} : memref<32x20xf32, #tpu.memory_space<vmem>>, vector<32x16xf32>,
    %c0_6 = arith.constant 0 : index
    %c0_7 = arith.constant 0 : index
    %9 = vector.load %arg7[%c0_6, %c0_7] : memref<32x20xf32, #tpu.memory_space<vmem>>, vector<32x16xf32>
    %c0_8 = arith.constant 0 : index
    %c2 = arith.constant 2 : index
    %10 = vector.load %arg7[%c0_8, %c2] : memref<32x20xf32, #tpu.memory_space<vmem>>, vector<32x16xf32>
    %c0_9 = arith.constant 0 : index
    %c4_10 = arith.constant 4 : index
    %11 = vector.load %arg7[%c0_9, %c4_10] : memref<32x20xf32, #tpu.memory_space<vmem>>, vector<32x16xf32>
    %12 = tpu.concatenate %9, %10, %11 in 0 : vector<32x16xf32>, vector<32x16xf32>, vector<32x16xf32> -> vector<96x16xf32>
    %c0_11 = arith.constant 0 : index
    %c0_12 = arith.constant 0 : index
    %13 = vector.load %arg3[%c0_11, %c0_12] : memref<32x96xf32, #tpu.memory_space<vmem>>, vector<32x96xf32>
    %cst = arith.constant dense<0.000000e+00> : vector<32x16xf32>
    %14 = tpu.matmul %13, %12, %cst {dimension_numbers = #tpu.dot_dimension_numbers<[1], [0], [0], [1], [0, 0, 1, 1], [], []>} : vector<32x96xf32>, vector<96x16xf32>, vector<32x16xf32> -> vector<32x16xf32>
    %c0_13 = arith.constant 0 : index
    %c0_14 = arith.constant 0 : index
    %15 = vector.load %arg5[%c0_13, %c0_14] : memref<32x2xf32, #tpu.memory_space<vmem>>, vector<32x1xf32>
    %16 = vector.broadcast %15 : vector<32x1xf32> to vector<32x16xf32>
    %17 = arith.addf %14, %16 : vector<32x16xf32>
    %cst_15 = arith.constant 0.000000e+00 : f32
    %18 = vector.broadcast %cst_15 : f32 to vector<32x16xf32>
    %19 = arith.maximumf %17, %18 : vector<32x16xf32>
    %c0_16 = arith.constant 0 : index
    %c0_17 = arith.constant 0 : index
    %20 = vector.load %arg4[%c0_16, %c0_17] : memref<32x32xf32, #tpu.memory_space<vmem>>, vector<32x32xf32>
    %cst_18 = arith.constant dense<0.000000e+00> : vector<32x16xf32>
    %21 = tpu.matmul %20, %19, %cst_18 {dimension_numbers = #tpu.dot_dimension_numbers<[1], [0], [0], [1], [0, 0, 1, 1], [], []>} : vector<32x32xf32>, vector<32x16xf32>, vector<32x16xf32> -> vector<32x16xf32>
    %c0_19 = arith.constant 0 : index
    %c1 = arith.constant 1 : index
    %22 = vector.load %arg5[%c0_19, %c1] : memref<32x2xf32, #tpu.memory_space<vmem>>, vector<32x1xf32>
    %23 = vector.broadcast %22 : vector<32x1xf32> to vector<32x16xf32>
    %24 = arith.addf %21, %23 : vector<32x16xf32>
    %25 = arith.addf %24, %1 : vector<32x16xf32>
    %cst_20 = arith.constant 0.000000e+00 : f32
    %26 = vector.broadcast %cst_20 : f32 to vector<32x16xf32>
    %27 = arith.maximumf %25, %26 : vector<32x16xf32>
    %c0_21 = arith.constant 0 : index
    %c0_22 = arith.constant 0 : index
    %c0_23 = arith.constant 0 : index
    %28 = vector.load %arg6[%c0_21, %c0_22, %c0_23] : memref<1x32x16xf32, #tpu.memory_space<vmem>>, vector<1x32x16xf32>
    %29 = vector.shape_cast %28 : vector<1x32x16xf32> to vector<32x16xf32>
    %30 = vector.shape_cast %27 : vector<32x16xf32> to vector<1x32x16xf32>
    tpu.vector_store %arg6[%c0_21, %c0_22, %c0_23], %30 {strides = array<i32>} : memref<1x32x16xf32, #tpu.memory_space<vmem>>, vector<1x32x16xf32>,
    return
  }
  func.func @transform_0(%arg0: i32, %arg1: i32) -> (i32, i32, i32) {
    %c0_i32 = arith.constant 0 : i32
    %c0_i32_0 = arith.constant 0 : i32
    return %arg0, %c0_i32, %arg1 : i32, i32, i32
  }
  func.func @transform_1(%arg0: i32, %arg1: i32) -> (i32, i32) {
    %c0_i32 = arith.constant 0 : i32
    %c0_i32_0 = arith.constant 0 : i32
    %c0_i32_1 = arith.constant 0 : i32
    return %c0_i32, %c0_i32_0 : i32, i32
  }
  func.func @transform_2(%arg0: i32, %arg1: i32) -> (i32, i32) {
    %c0_i32 = arith.constant 0 : i32
    %c0_i32_0 = arith.constant 0 : i32
    %c0_i32_1 = arith.constant 0 : i32
    return %c0_i32, %c0_i32_0 : i32, i32
  }
  func.func @transform_3(%arg0: i32, %arg1: i32) -> (i32, i32) {
    %c0_i32 = arith.constant 0 : i32
    %c0_i32_0 = arith.constant 0 : i32
    %c0_i32_1 = arith.constant 0 : i32
    return %c0_i32, %c0_i32_0 : i32, i32
  }
  func.func @transform_4(%arg0: i32, %arg1: i32) -> (i32, i32, i32) {
    %c0_i32 = arith.constant 0 : i32
    %c0_i32_0 = arith.constant 0 : i32
    return %arg0, %c0_i32, %arg1 : i32, i32, i32
  }
}

</mosaic_0001>

<bundles_post_ra>
// kernel: tpu_custom_call.1
= control target key start
LH: loop header
LB: loop body
LE: loop exit
PB: predicated region body
PF: predicated region fallthrough
CT: control target
= control target key end

     0   :  { %s898_s15 = smov 0   ;;  %s900_s16 = smov 0   ;;  %s998_s0 = inlined_call_operand.vmem [shape: f32[2,32,16], index: 0, kind: input, shape index: {}]   ;;  %s999_s1 = inlined_call_operand.vmem [shape: f32[32,96], index: 1, kind: input, shape index: {}]   ;;  %s1000_s2 = inlined_call_operand.vmem [shape: f32[32,32], index: 2, kind: input, shape index: {}]   ;;  %s1001_s3 = inlined_call_operand.vmem [shape: f32[32,2], index: 3, kind: input, shape index: {}]   ;;  %s1002_s4 = inlined_call_operand.vmem [shape: f32[2,32,16], index: 4, kind: output, shape index: {}]  }
   0x1   :  { %s902_s17 = smov 0  }
   0x2 LB: > { %s26_s18 = sadd.s32 1, %s861_s16  ;;  %p672_p0 = scmp.ge.s32.totalorder %s865_s17, 1  ;;  %s865_s17 = sphi %s902_s17, %s14_s17   ;;  %s861_s16 = sphi %s900_s16, %s1004_s16   ;;  %s857_s15 = sphi %s898_s15, %s1003_s15  }
   0x3   : > { %p28_p1 = scmp.ge.s32.totalorder %s26_s18, 2  ;;  %p181_p2 = scmp.lt.s32.totalorder %s865_s17, 3 }
   0x5   : > { %s1006_s18 = smov (%p28_p1, %s26_s18), 0  ;;  %p182_p3 = pnand %p672_p0, %p181_p2 }
   0x6   : > { %p213_p4 = scmp.lt.s32.totalorder (!%p182_p3), %s857_s15, 1  ;;  %vm237_vm0 = vcmask (!%p182_p3), 31744   ;;  %v867_v0 = vmov (!%p182_p3), 0.0   ;;  %s868_s23 = smov (!%p182_p3), 4   ;;  %vm287_vm1 = vcmask (!%p182_p3), 162848   ;;  %v324_v17 = vld [vmem:[%s999_s1] sm:$0xff] (!%p182_p3) }
   0x7   : > { %185 = sbr.rel (%p182_p3) target bundleno = 733 (0x2dd), region = 36  ;;  %240 = vst.msk [vmem:[#allocation2 + $0x10] sm:$0xff] (!%p182_p3), %vm237_vm0, %v867_v0  ;;  %238 = vst.msk [vmem:[#allocation2] sm:$0xff] (!%p182_p3), %vm237_vm0, %v867_v0  ;;  %s869_s24 = smov (!%p182_p3), 126   ;;  %vm352_vm2 = vcmask (!%p182_p3), 785408   ;;  %v329_v18 = vld [vmem:[%s1001_s3 + $0x8] sm:$0xff] (!%p182_p3) }
   0x8   : > { %239 = vst.msk [vmem:[#allocation2 + $0x8] sm:$0xff] (!%p182_p3), %vm237_vm0, %v867_v0  ;;  %241 = vst.msk [vmem:[#allocation2 + $0x18] sm:$0xff] (!%p182_p3), %vm237_vm0, %v867_v0  ;;  %s870_s25 = smov (!%p182_p3), 124   ;;  %737 = vmatprep.mubr.msk.f32.mxu0 (!%p182_p3), %vm352_vm2, %v324_v17  ;;  %v328_v19 = vld [vmem:[%s1001_s3] sm:$0xff] (!%p182_p3)  ;;  %v871_v20 = vmov (!%p182_p3), 0   ;;  %v330_v21 = vld [vmem:[%s1001_s3 + $0x10] sm:$0xff] (!%p182_p3) }
   0x9   : > { %840 = vset.pattern.permute.xlu1 (!%p182_p3), %v871_v20  ;;  %839 = vset.pattern.permute.xlu0 (!%p182_p3), %v871_v20  ;;  %v331_v22 = vld [vmem:[%s1001_s3 + $0x18] sm:$0xff] (!%p182_p3)  ;;  %v325_v39 = vld [vmem:[%s999_s1 + $0x8] sm:$0xff] (!%p182_p3)  ;;  %v326_v40 = vld [vmem:[%s999_s1 + $0x10] sm:$0xff] (!%p182_p3)  ;;  %vm474_vm3 = vcmask (!%p182_p3), 261120   ;;  %v872_v43 = vmov (!%p182_p3), 1   ;;  %vm580_vm4 = vcmask (!%p182_p3), 130048  }
   0xa   : > { %v327_v41 = vld [vmem:[%s999_s1 + $0x18] sm:$0xff] (!%p182_p3)  ;;  %v454_v42 = vld [vmem:[%s1000_s2] sm:$0xff] (!%p182_p3)  ;;  %v455_v62 = vld [vmem:[%s1000_s2 + $0x8] sm:$0xff] (!%p182_p3) }
   0xb   : > { %751 = vmatprep.mubr.msk.f32.mxu1 (!%p182_p3), %vm474_vm3, %v454_v42  ;;  %v456_v63 = vld [vmem:[%s1000_s2 + $0x10] sm:$0xff] (!%p182_p3)  ;;  %v457_v0 = vld [vmem:[%s1000_s2 + $0x18] sm:$0xff] (!%p182_p3) }
   0xe   : > { %s1008_s15 = smov (!%p213_p4, %s857_s15), 1 }
   0xf   : > { %s687_s19 = sshll.u32 %s1008_s15, 5 }
  0x10   : > { %s220_s22 = scalar_lea.vmem %s998_s0, %s687_s19  ;;  %s228_s5 = scalar_lea.vmem %s1002_s4, %s687_s19 }
  0x11   : > { %v924_v1 = vld [vmem:[%s220_s22 + $0x10] sm:$0xff]  ;;  %v926_v2 = vld [vmem:[%s220_s22] sm:$0xff]  ;;  %v930_v3 = vld [vmem:[%s220_s22 + $0x18] sm:$0xff] }
  0x12   : > { %279 = vrot.lane.b32.xlu1 %v924_v1, %s868_s23  ;;  %275 = vrot.lane.b32.xlu0 %v926_v2, %s868_s23  ;;  %v932_v4 = vld [vmem:[%s220_s22 + $0x8] sm:$0xff] }
  0x16   : > { %281 = vrot.lane.b32.xlu1 %v930_v3, %s868_s23  ;;  %277 = vrot.lane.b32.xlu0 %v932_v4, %s868_s23 }
  0x84   : > { %v280_v5 = vpop.permute.xlu1 %279  ;;  %v276_v6 = vpop.permute.xlu0 %275 }
  0x85   : > { %290 = vst.msk [vmem:[#allocation2 + $0x10] sm:$0xff] %vm287_vm1, %v280_v5  ;;  %288 = vst.msk [vmem:[#allocation2] sm:$0xff] %vm287_vm1, %v276_v6 }
  0x88   : > { %v282_v7 = vpop.permute.xlu1 %281  ;;  %v278_v8 = vpop.permute.xlu0 %277 }
  0x89   : > { %291 = vst.msk [vmem:[#allocation2 + $0x18] sm:$0xff] %vm287_vm1, %v282_v7  ;;  %289 = vst.msk [vmem:[#allocation2 + $0x8] sm:$0xff] %vm287_vm1, %v278_v8 }
  0x8c   : > { %v294_v9 = vld [vmem:[#allocation2 + $0x10] sm:$0xff]  ;;  %v292_v11 = vld [vmem:[#allocation2] sm:$0xff] }
  0x90   : > { %v295_v10 = vld [vmem:[#allocation2 + $0x18] sm:$0xff]  ;;  %v293_v12 = vld [vmem:[#allocation2 + $0x8] sm:$0xff] }
  0x91   : > { %v824_v13 = vpack.i.bf16 %v295_v10, %v294_v9  ;;  %v819_v14 = vpack.i.bf16 %v293_v12, %v292_v11  ;;  %v757_v15 = vpack.c.bf16 %v293_v12, %v292_v11  ;;  %v761_v16 = vpack.c.bf16 %v295_v10, %v294_v9 }
  0x93   : > { %825 = vrot.lane.b32.xlu1 %v824_v13, %s869_s24  ;;  %820 = vrot.lane.b32.xlu0 %v819_v14, %s869_s24 }
  0x94   : > { %758 = vmatprep.subr.bf16.mxu0 %v757_v15 }
  0x95   : > { %760 = vmatpush3.bf16.msra.mxu0 %v757_v15 }
  0x96   : > { %762 = vmatprep.subr.bf16.mxu0 %v761_v16 }
  0x97   : > { %835 = vrot.lane.b32.xlu1 %v824_v13, %s870_s25  ;;  %830 = vrot.lane.b32.xlu0 %v819_v14, %s870_s25 }
  0x99   : > { %764 = vmatpush3.bf16.msra.mxu0 %v761_v16 }
  0x9b   : > { %339 = vperm.xlu1 %840, %v329_v18   ;;  %334 = vperm.xlu0 %839, %v328_v19  }
  0x9f   : > { %344 = vperm.xlu1 %840, %v330_v21   ;;  %349 = vperm.xlu0 %839, %v331_v22  }
  0xa3   : > { %841 = vset.pattern.permute.xlu1 %v872_v43  ;;  %842 = vset.pattern.permute.xlu0 %v872_v43 }
  0xa4   : > { %459 = vperm.xlu1 %841, %v328_v19   ;;  %463 = vperm.xlu0 %842, %v329_v18  }
  0xa8   : > { %467 = vperm.xlu1 %841, %v330_v21  }
  0xac   : > { %471 = vperm.xlu1 %841, %v331_v22  }
 0x105   : > { %v826_v23 = vpop.permute.xlu1 %825  ;;  %v821_v24 = vpop.permute.xlu0 %820 }
 0x106   : > { %v828_v25 = vunpack.i.h.bf16 %v826_v23  ;;  %v827_v26 = vunpack.i.l.bf16 %v826_v23  ;;  %v823_v27 = vunpack.i.h.bf16 %v821_v24  ;;  %v822_v28 = vunpack.i.l.bf16 %v821_v24 }
 0x108   : > { %v765_v29 = vpack.c.bf16 %v823_v27, %v822_v28  ;;  %v769_v31 = vpack.c.bf16 %v828_v25, %v827_v26 }
 0x109   : > { %v831_v30 = vpop.permute.xlu0 %830  ;;  %v836_v34 = vpop.permute.xlu1 %835 }
 0x10a   : > { %v833_v32 = vunpack.i.h.bf16 %v831_v30  ;;  %v832_v33 = vunpack.i.l.bf16 %v831_v30  ;;  %766 = vmatprep.subr.bf16.mxu0 %v765_v29  ;;  %v838_v35 = vunpack.i.h.bf16 %v836_v34  ;;  %v837_v36 = vunpack.i.l.bf16 %v836_v34 }
 0x10b   : > { %768 = vmatpush3.bf16.msra.mxu0 %v765_v29 }
 0x10c   : > { %770 = vmatprep.subr.bf16.mxu0 %v769_v31  ;;  %v773_v37 = vpack.c.bf16 %v833_v32, %v832_v33  ;;  %v777_v38 = vpack.c.bf16 %v838_v35, %v837_v36 }
 0x10f   : > { %772 = vmatpush3.bf16.msra.mxu0 %v769_v31 }
 0x110   : > { %774 = vmatprep.subr.bf16.mxu0 %v773_v37 }
 0x113   : > { %776 = vmatpush3.bf16.msra.mxu0 %v773_v37 }
 0x114   : > { %778 = vmatprep.subr.bf16.mxu0 %v777_v38 }
 0x117   : > { %780 = vmatpush3.bf16.msra.mxu0 %v777_v38 }
 0x11a   : > { %738 = vmatmul.mubr.msk.f32.vlgmr.msra.gmra.mrb[0].mxu0 %vm352_vm2, %v325_v39  ;;  %v335_v44 = vpop.permute.xlu0 %334  ;;  %v340_v45 = vpop.permute.xlu1 %339 }
 0x11b   : > { %740 = vmatprep.mubr.msk.f32.mxu0 %vm352_vm2, %v326_v40 }
 0x11e   : > { %741 = vmatmul.mubr.msk.f32.gmra.mrb[2].mxu0 %vm352_vm2, %v327_v41  ;;  %v350_v51 = vpop.permute.xlu0 %349  ;;  %v345_v54 = vpop.permute.xlu1 %344 }
 0x123   : > { %v460_v5 = vpop.permute.xlu1 %459  ;;  %v464_v7 = vpop.permute.xlu0 %463 }
 0x127   : > { %v468_v6 = vpop.permute.xlu1 %467 }
 0x12b   : > { %v472_v13 = vpop.permute.xlu1 %471 }
 0x1ed   : > { %v739_v46 = vpop.f32.mrb[0].mxu0 }
 0x1ee   : > { %v437_v47 = vadd.f32 %v739_v46, %v340_v45  ;;  %v431_v48 = vpop.f32.mrb[1].mxu0 }
 0x1ef   : > { %v432_v49 = vadd.f32 %v431_v48, %v335_v44 }
 0x1f0   : > { %v451_v50 = vmax.f32 %v437_v47, 0.0 }
 0x1f1   : > { %v450_v52 = vmax.f32 %v432_v49, 0.0  ;;  %v742_v53 = vpop.f32.mrb[2].mxu0 }
 0x1f2   : > { %v447_v55 = vadd.f32 %v742_v53, %v350_v51  ;;  %v441_v56 = vpop.f32.mrb[3].mxu0 }
 0x1f3   : > { %v442_v57 = vadd.f32 %v441_v56, %v345_v54  ;;  %v781_v58 = vpack.c.bf16 %v451_v50, %v450_v52 }
 0x1f4   : > { %v453_v59 = vmax.f32 %v447_v55, 0.0 }
 0x1f5   : > { %v452_v60 = vmax.f32 %v442_v57, 0.0  ;;  %782 = vmatprep.subr.bf16.mxu1 %v781_v58 }
 0x1f6   : > { %784 = vmatpush3.bf16.msra.mxu1 %v781_v58 }
 0x1f7   : > { %v785_v61 = vpack.c.bf16 %v453_v59, %v452_v60 }
 0x1f9   : > { %786 = vmatprep.subr.bf16.mxu1 %v785_v61 }
 0x1fa   : > { %788 = vmatpush3.bf16.msra.mxu1 %v785_v61 }
 0x1fd   : > { %752 = vmatmul.mubr.msk.f32.vlgmr.msra.gmra.mrb[0].mxu1 %vm474_vm3, %v455_v62 }
 0x1fe   : > { %754 = vmatprep.mubr.msk.f32.mxu1 %vm474_vm3, %v456_v63 }
 0x201   : > { %755 = vmatmul.mubr.msk.f32.gmra.mrb[2].mxu1 %vm474_vm3, %v457_v0 }
 0x2d0   : > { %v753_v8 = vpop.f32.mrb[0].mxu1 }
 0x2d1   : > { %v559_v9 = vadd.f32 %v753_v8, %v464_v7  ;;  %v553_v10 = vpop.f32.mrb[1].mxu1 }
 0x2d2   : > { %v554_v11 = vadd.f32 %v553_v10, %v460_v5 }
 0x2d3   : > { %v573_v12 = vadd.f32 %v559_v9, %v932_v4 }
 0x2d4   : > { %v572_v14 = vadd.f32 %v554_v11, %v926_v2  ;;  %v756_v15 = vpop.f32.mrb[2].mxu1 }
 0x2d5   : > { %v577_v16 = vmax.f32 %v573_v12, 0.0  ;;  %v569_v17 = vadd.f32 %v756_v15, %v472_v13  ;;  %v563_v18 = vpop.f32.mrb[3].mxu1 }
 0x2d6   : > { %v576_v19 = vmax.f32 %v572_v14, 0.0  ;;  %v564_v20 = vadd.f32 %v563_v18, %v468_v6 }
 0x2d7   : > { %582 = vst.msk [vmem:[%s228_s5 + $0x8] sm:$0xff] %vm580_vm4, %v577_v16  ;;  %v575_v21 = vadd.f32 %v569_v17, %v930_v3 }
 0x2d8   : > { %581 = vst.msk [vmem:[%s228_s5] sm:$0xff] %vm580_vm4, %v576_v19  ;;  %v574_v4 = vadd.f32 %v564_v20, %v924_v1 }
 0x2d9   : > { %v579_v22 = vmax.f32 %v575_v21, 0.0 }
 0x2da   : > { %v578_v23 = vmax.f32 %v574_v4, 0.0 }
 0x2db   : > { %584 = vst.msk [vmem:[%s228_s5 + $0x18] sm:$0xff] %vm580_vm4, %v579_v22 }
 0x2dc   : > { %583 = vst.msk [vmem:[%s228_s5 + $0x10] sm:$0xff] %vm580_vm4, %v578_v23 }
 0x2dd PF: > { %s14_s17 = sadd.s32 1, %s865_s17   ;;  %s1003_s15 = smov %s861_s16 }
 0x2de   : > { %p11_p5 = scmp.ge.s32.totalorder %s14_s17, 4   ;;  %s1004_s16 = smov %s1006_s18 }
 0x2e0   :  { %13 = sbr.rel (!%p11_p5) target bundleno = 2 (0x2), region = 74 }

</bundles_post_ra>
